<compile_context>
chip_gen: v7x
topology: tpu7x:2x2x1
jax: 0.10.0
libtpu: 0.0.40
codegen_flags: <defaults>
</compile_context>

<pallas_src>
import functools
import math

import jax
import jax.numpy as jnp
from jax.experimental import pallas as pl
from jax.experimental.pallas import tpu as pltpu


def _round_up(a, b):
    return (a + b - 1) // b * b


def _pick_tile_m(M, desired):
    """Sublane-aligned M tile.

    Prefers (a) >= 2 tiles when M is large enough (megacore / v7x 2-TC) and
    (b) a tile that divides the 8-rounded M so x needs no HBM pad copy.
    Returns (tile_m, padded_M).
    """
    if M <= 8:
        return M, M                      # single block equal to full M, no pad
    m8 = _round_up(M, 8)
    cap = max(8, min(_round_up(desired, 8), m8))
    if m8 >= 16:                         # keep both v7x TensorCores busy
        cap = min(cap, _round_up((m8 + 1) // 2, 8))
    tm = cap
    while tm >= max(8, cap // 2):        # look for a dividing tile near cap
        if m8 % tm == 0:
            return tm, m8
        tm -= 8
    return cap, _round_up(m8, cap)


def _pick_tile_out(out_p, desired):
    """Lane-aligned out tile that divides the (128-padded) out dimension."""
    desired = max(128, min(_round_up(desired, 128), out_p))
    to = desired
    while to > 128:
        if out_p % to == 0:
            return to
        to -= 128
    return 128


def _svd_kernel_resident(x_ref, vst_ref, ut_ref, o_ref, *, t_dtype):
    """1-D grid over M; both factors fully VMEM-resident (single-buffered).

    x_ref  : (tm, in_features)
    vst_ref: (in_features, rank_p)   -- (S*V).T, pre-transposed in the wrapper
    ut_ref : (rank_p, out_features)  -- U.T, pre-transposed in the wrapper
    o_ref  : (tm, out_features)      -- one lane-dense full-width store
    """
    t = jnp.dot(x_ref[...], vst_ref[...], preferred_element_type=jnp.float32)
    o_ref[...] = jnp.dot(t.astype(t_dtype), ut_ref[...],
                         preferred_element_type=jnp.float32).astype(o_ref.dtype)


def _svd_kernel_tiled(x_ref, vst_ref, ut_ref, o_ref, t_ref, *, t_dtype):
    """2-D grid over (M, out); t carried in f32 scratch across the out axis.

    The out axis (program_id(1)) must stay 'arbitrary' and innermost: t_ref is
    filled at j == 0 and reused for every out tile of the same M tile.
    """
    @pl.when(pl.program_id(1) == 0)
    def _():
        t_ref[...] = jnp.dot(x_ref[...], vst_ref[...],
                             preferred_element_type=jnp.float32)

    o_ref[...] = jnp.dot(t_ref[...].astype(t_dtype), ut_ref[...],
                         preferred_element_type=jnp.float32).astype(o_ref.dtype)


@functools.partial(jax.jit,
                   static_argnames=("tile_m", "tile_out", "downcast_intermediate"))
def svd_linear(x, U, S, V, *, tile_m=512, tile_out=512,
               downcast_intermediate=False):
    """Pallas implementation of SVDLinear.forward.

    x: (M, in_features), U: (out_features, rank), S: (rank,), V: (rank, in_features)
    returns (M, out_features) = ((x @ V.T) * S) @ U.T
    """
    M, in_features = x.shape
    out_features, rank = U.shape
    dtype = x.dtype
    dsz = jnp.dtype(dtype).itemsize

    t_dtype = (jnp.bfloat16
               if (downcast_intermediate and jnp.dtype(dtype) == jnp.dtype(jnp.bfloat16))
               else jnp.float32)

    # Fold diag(S) into V and pre-transpose both factors once (tiny weight ops,
    # outside the hot path).  Only the rank dim is zero-padded (to 128 lanes);
    # x / out are never padded along in/out here.
    rank_p = _round_up(rank, 128)
    VsT = (V * S[:, None]).T.astype(dtype)                 # (in_features, rank)
    UT = U.T.astype(dtype)                                 # (rank, out_features)
    if rank_p != rank:
        VsT = jnp.pad(VsT, ((0, 0), (0, rank_p - rank)))
        UT = jnp.pad(UT, ((0, rank_p - rank), (0, 0)))

    # Per-generation VMEM budget: ~100 MiB usable on v5e/v6e (128 MiB physical),
    # ~52 MiB on v7x (64 MiB per TensorCore), keeping Mosaic scratch headroom.
    try:
        vmem_cap = int(pltpu.get_tpu_info().vmem_capacity_bytes)
    except Exception:
        vmem_cap = 64 * 1024 * 1024                         # conservative (v7x)
    budget = min(vmem_cap - 12 * 1024 * 1024, 100 * 1024 * 1024)
    _HEADROOM = 2 * 1024 * 1024

    tm0, m_p0 = _pick_tile_m(M, tile_m)

    # ------------------------------------------------------------------ fast
    # Collapse the out axis: both factors resident (single-buffered), 1-D grid.
    def fast_footprint(tm_):
        return (in_features * rank_p * dsz            # VsT resident (1 buffer)
                + rank_p * out_features * dsz          # UT  resident (1 buffer)
                + 2 * tm_ * in_features * dsz          # x tile (double-buffered)
                + 2 * tm_ * out_features * dsz         # out tile (double-buffered)
                + tm_ * rank_p * 4                     # f32 intermediate t
                + _HEADROOM)

    tm, m_p = tm0, m_p0
    while tm > 8 and fast_footprint(tm) > budget:
        tm, m_p = _pick_tile_m(M, max(8, tm // 2))

    if fast_footprint(tm) <= budget:
        x_p = x if m_p == M else jnp.pad(x, ((0, m_p - M), (0, 0)))
        vmem_limit = int(min(budget, max(fast_footprint(tm), 32 * 1024 * 1024)))
        kernel = functools.partial(_svd_kernel_resident, t_dtype=t_dtype)
        y_p = pl.pallas_call(
            kernel,
            out_shape=jax.ShapeDtypeStruct((m_p, out_features), dtype),
            grid_spec=pltpu.PrefetchScalarGridSpec(
                num_scalar_prefetch=0,
                grid=(m_p // tm,),
                in_specs=[
                    pl.BlockSpec((tm, in_features), lambda i: (i, 0)),
                    pl.BlockSpec((in_features, rank_p), lambda i: (0, 0),
                                 pipeline_mode=pl.Buffered(1)),    # resident
                    pl.BlockSpec((rank_p, out_features), lambda i: (0, 0),
                                 pipeline_mode=pl.Buffered(1)),    # resident
                ],
                out_specs=pl.BlockSpec((tm, out_features), lambda i: (i, 0)),
            ),
            compiler_params=pltpu.CompilerParams(
                dimension_semantics=("parallel",),
                vmem_limit_bytes=vmem_limit,
            ),
        )(x_p, VsT, UT)
        return y_p if m_p == M else y_p[:M]

    # -------------------------------------------------------------- fallback
    # Tile the out dimension; t carried in VMEM scratch across out tiles.
    out_p = _round_up(out_features, 128)
    if out_p != out_features:
        UT = jnp.pad(UT, ((0, 0), (0, out_p - out_features)))
    to = _pick_tile_out(out_p, tile_out)

    def tiled_footprint(tm_, to_):
        return (in_features * rank_p * dsz             # VsT resident (1 buffer)
                + 2 * rank_p * to_ * dsz               # UT tile (double-buffered)
                + 2 * tm_ * in_features * dsz          # x tile (double-buffered)
                + 2 * tm_ * to_ * dsz                  # out tile (double-buffered)
                + tm_ * rank_p * 4                     # f32 scratch t
                + _HEADROOM)

    tm, m_p = tm0, m_p0
    while tm > 8 and tiled_footprint(tm, to) > budget:
        tm, m_p = _pick_tile_m(M, max(8, tm // 2))
    while to > 128 and tiled_footprint(tm, to) > budget:
        to = _pick_tile_out(out_p, max(128, to // 2))
    # Note: for extremely large in_features the x/VsT tiles alone may exceed
    # the budget; a K-chunked (in_features-tiled) first matmul would cap VMEM
    # independently of in_features but is not implemented here.

    x_p = x if m_p == M else jnp.pad(x, ((0, m_p - M), (0, 0)))
    vmem_limit = int(min(budget, max(tiled_footprint(tm, to), 32 * 1024 * 1024)))
    kernel = functools.partial(_svd_kernel_tiled, t_dtype=t_dtype)
    y_p = pl.pallas_call(
        kernel,
        out_shape=jax.ShapeDtypeStruct((m_p, out_p), dtype),
        grid_spec=pltpu.PrefetchScalarGridSpec(
            num_scalar_prefetch=0,
            grid=(m_p // tm, out_p // to),
            in_specs=[
                pl.BlockSpec((tm, in_features), lambda i, j: (i, 0)),
                pl.BlockSpec((in_features, rank_p), lambda i, j: (0, 0),
                             pipeline_mode=pl.Buffered(1)),        # resident
                pl.BlockSpec((rank_p, to), lambda i, j: (0, j)),
            ],
            out_specs=pl.BlockSpec((tm, to), lambda i, j: (i, j)),
            scratch_shapes=[pltpu.VMEM((tm, rank_p), jnp.float32)],
        ),
        compiler_params=pltpu.CompilerParams(
            # out axis MUST stay 'arbitrary' (innermost) for the scratch carry.
            dimension_semantics=("parallel", "arbitrary"),
            vmem_limit_bytes=vmem_limit,
        ),
    )(x_p, VsT, UT)

    if m_p != M or out_p != out_features:
        y_p = y_p[:M, :out_features]
    return y_p


def init_svd_linear_params(key, in_features, out_features, rank, dtype=jnp.float32):
    """Deterministic init matching SVDLinear.reset_parameters semantics.

    kaiming_normal_ (fan_in, gain=sqrt(2)):  std = sqrt(2 / fan_in)
    U: (out_features, rank)   fan_in = rank
    V: (rank, in_features)    fan_in = in_features
    S: ones(rank)
    """
    k_u, k_v = jax.random.split(key)
    U = jax.random.normal(k_u, (out_features, rank), dtype) * math.sqrt(2.0 / rank)
    V = jax.random.normal(k_v, (rank, in_features), dtype) * math.sqrt(2.0 / in_features)
    S = jnp.ones((rank,), dtype)
    return U, S, V


if __name__ == "__main__":
    key = jax.random.PRNGKey(0)
    k_x, k_p, k_s = jax.random.split(key, 3)

    M, in_features, out_features, rank = 8, 32, 32, 8
    x = jax.random.normal(k_x, (M, in_features), jnp.float32)
    U, S, V = init_svd_linear_params(k_p, in_features, out_features, rank)
    # Non-trivial singular values so the S-folding path is actually exercised.
    S = jax.random.uniform(k_s, (rank,), jnp.float32, 0.5, 1.5)

    y = svd_linear(x, U, S, V)
    y = jax.block_until_ready(y)

    # Reference check against plain JAX (same math as the torch forward).
    y_ref = ((x @ V.T) * S) @ U.T
    assert y.shape == (M, out_features)
    assert jnp.allclose(y, y_ref, atol=1e-4, rtol=1e-4), "mismatch vs reference"

    print("KERNEL_OK")
</pallas_src>

<mosaic_0001>
module attributes {stable_mosaic.version = 11 : i64} {
  func.func @_svd_kernel_resident(%arg0: i32, %arg1: memref<8x32xf32, #tpu.memory_space<vmem>>, %arg2: memref<32x128xf32, #tpu.memory_space<vmem>>, %arg3: memref<128x32xf32, #tpu.memory_space<vmem>>, %arg4: memref<8x32xf32, #tpu.memory_space<vmem>>) attributes {dimension_semantics = [#tpu.dimension_semantics<parallel>], iteration_bounds = array<i64: 1>, scalar_prefetch = 0 : i64, scratch_operands = 0 : i64, tpu.core_type = #tpu.core_type<tc>, window_params = [{transform_indices = @transform_0, window_bounds = array<i64: 8, 32>}, {pipeline_mode = #tpu.pipeline_mode<synchronous>, transform_indices = @transform_1, window_bounds = array<i64: 32, 128>}, {pipeline_mode = #tpu.pipeline_mode<synchronous>, transform_indices = @transform_2, window_bounds = array<i64: 128, 32>}, {transform_indices = @transform_3, window_bounds = array<i64: 8, 32>}]} {
    %c0 = arith.constant 0 : index
    %c0_0 = arith.constant 0 : index
    %0 = vector.load %arg1[%c0, %c0_0] : memref<8x32xf32, #tpu.memory_space<vmem>>, vector<8x32xf32>
    %c0_1 = arith.constant 0 : index
    %c0_2 = arith.constant 0 : index
    %1 = vector.load %arg2[%c0_1, %c0_2] : memref<32x128xf32, #tpu.memory_space<vmem>>, vector<32x128xf32>
    %cst = arith.constant dense<0.000000e+00> : vector<8x128xf32>
    %2 = tpu.matmul %0, %1, %cst {dimension_numbers = #tpu.dot_dimension_numbers<[1], [0], [0], [1], [0, 0, 1, 1], [], []>} : vector<8x32xf32>, vector<32x128xf32>, vector<8x128xf32> -> vector<8x128xf32>
    %c0_3 = arith.constant 0 : index
    %c0_4 = arith.constant 0 : index
    %3 = vector.load %arg3[%c0_3, %c0_4] : memref<128x32xf32, #tpu.memory_space<vmem>>, vector<128x32xf32>
    %cst_5 = arith.constant dense<0.000000e+00> : vector<8x32xf32>
    %4 = tpu.matmul %2, %3, %cst_5 {dimension_numbers = #tpu.dot_dimension_numbers<[1], [0], [0], [1], [0, 0, 1, 1], [], []>} : vector<8x128xf32>, vector<128x32xf32>, vector<8x32xf32> -> vector<8x32xf32>
    %c0_6 = arith.constant 0 : index
    %c0_7 = arith.constant 0 : index
    %5 = vector.load %arg4[%c0_6, %c0_7] : memref<8x32xf32, #tpu.memory_space<vmem>>, vector<8x32xf32>
    tpu.vector_store %arg4[%c0_6, %c0_7], %4 {strides = array<i32>} : memref<8x32xf32, #tpu.memory_space<vmem>>, vector<8x32xf32>,
    return
  }
  func.func @transform_0(%arg0: i32) -> (i32, i32) {
    %c0_i32 = arith.constant 0 : i32
    %c0_i32_0 = arith.constant 0 : i32
    return %arg0, %c0_i32 : i32, i32
  }
  func.func @transform_1(%arg0: i32) -> (i32, i32) {
    %c0_i32 = arith.constant 0 : i32
    %c0_i32_0 = arith.constant 0 : i32
    %c0_i32_1 = arith.constant 0 : i32
    return %c0_i32, %c0_i32_0 : i32, i32
  }
  func.func @transform_2(%arg0: i32) -> (i32, i32) {
    %c0_i32 = arith.constant 0 : i32
    %c0_i32_0 = arith.constant 0 : i32
    %c0_i32_1 = arith.constant 0 : i32
    return %c0_i32, %c0_i32_0 : i32, i32
  }
  func.func @transform_3(%arg0: i32) -> (i32, i32) {
    %c0_i32 = arith.constant 0 : i32
    %c0_i32_0 = arith.constant 0 : i32
    return %arg0, %c0_i32 : i32, i32
  }
}

</mosaic_0001>

<bundles_post_ra>
// kernel: svd_linear.1
= control target key start
LH: loop header
LB: loop body
LE: loop exit
PB: predicated region body
PF: predicated region fallthrough
CT: control target
= control target key end

     0   :  { %v322_v3 = vmov 0.0|0.0   ;;  %vm323_vm0 = vmmov 0   ;;  %v324_v6 = vmov 0.0   ;;  %vm20_vm1 = vcmask 261120   ;;  %s423_s0 = inlined_call_operand.vmem [shape: f32[8,32], index: 0, kind: input, shape index: {}]   ;;  %s424_s1 = inlined_call_operand.vmem [shape: f32[32,128], index: 1, kind: input, shape index: {}]   ;;  %s425_s2 = inlined_call_operand.vmem [shape: f32[128,32], index: 2, kind: input, shape index: {}]   ;;  %s426_s3 = inlined_call_operand.hbm [shape: f32[8,32], index: 3, kind: output, shape index: {}]  }
   0x1   :  { %v16_v0 = vld [vmem:[%s424_s1] sm:$0xff]  ;;  %v17_v1 = vld [vmem:[%s424_s1 + $0x8] sm:$0xff]  ;;  %v18_v2 = vld [vmem:[%s424_s1 + $0x10] sm:$0xff]  ;;  %264 = vmatprep.subr.bf16.mxu0 %v322_v3  ;;  %226 = vmatprep.mubr.msk.f32.mxu0 %vm323_vm0, %v324_v6 }
   0x2   :  { %v265_v4 = vpack.c.bf16 %v17_v1, %v16_v0  ;;  %v19_v5 = vld [vmem:[%s424_s1 + $0x18] sm:$0xff]  ;;  %v94_v7 = vld [vmem:[%s425_s2] sm:$0xff]  ;;  %270 = vmatprep.subr.bf16.mxu1 %v322_v3  ;;  %v95_v8 = vld [vmem:[%s425_s2 + $0x8] sm:$0xff]  ;;  %261 = vmatprep.mubr.msk.f32.mxu1 %vm323_vm0, %v324_v6 }
   0x3   :  { %v96_v9 = vld [vmem:[%s425_s2 + $0x10] sm:$0xff]  ;;  %v97_v10 = vld [vmem:[%s425_s2 + $0x18] sm:$0xff]  ;;  %v268_v11 = vpack.c.bf16 %v19_v5, %v18_v2  ;;  %v271_v12 = vpack.c.bf16 %v95_v8, %v94_v7  ;;  %v98_v14 = vld [vmem:[%s425_s2 + $0x20] sm:$0xff] }
   0x4   :  { %266 = vmatpush3.bf16.msra.mxu0 %v265_v4  ;;  %v274_v13 = vpack.c.bf16 %v97_v10, %v96_v9  ;;  %v99_v15 = vld [vmem:[%s425_s2 + $0x28] sm:$0xff]  ;;  %v15_v16 = vld [vmem:[%s423_s0] sm:$0xff] }
   0x5   :  { %267 = vmatprep.subr.bf16.mxu0 %v322_v3  ;;  %272 = vmatpush3.bf16.msra.mxu1 %v271_v12 }
   0x6   :  { %273 = vmatprep.subr.bf16.mxu1 %v322_v3 }
   0x8   :  { %269 = vmatpush3.bf16.msra.mxu0 %v268_v11 }
   0x9   :  { %8 = vsyncpa [#allocation3], 0  ;;  %275 = vmatpush3.bf16.msra.mxu1 %v274_v13  ;;  %v277_v17 = vpack.c.bf16 %v99_v15, %v98_v14  ;;  %v100_v18 = vld [vmem:[%s425_s2 + $0x30] sm:$0xff]  ;;  %v101_v19 = vld [vmem:[%s425_s2 + $0x38] sm:$0xff]  ;;  %s325_s25 = smov [#allocation2]  }
   0xa   :  { %276 = vmatprep.subr.bf16.mxu1 %v322_v3  ;;  %v280_v20 = vpack.c.bf16 %v101_v19, %v100_v18  ;;  %v102_v21 = vld [vmem:[%s425_s2 + $0x40] sm:$0xff]  ;;  %v103_v22 = vld [vmem:[%s425_s2 + $0x48] sm:$0xff]  ;;  %v104_v24 = vld [vmem:[%s425_s2 + $0x50] sm:$0xff]  ;;  %s187_s26 = sshll.u32 %s325_s25, 4  ;;  %s188_s26 = int_to_ptr.vmem [resolvable:$true] %s187_s26 }
   0xb   :  { %227 = vmatmul.mubr.msk.f32.vlgmr.msra.gmra.mrb[0].mxu0 %vm20_vm1, %v15_v16  ;;  %v283_v23 = vpack.c.bf16 %v103_v22, %v102_v21  ;;  %v105_v25 = vld [vmem:[%s425_s2 + $0x58] sm:$0xff]  ;;  %v106_v27 = vld [vmem:[%s425_s2 + $0x60] sm:$0xff]  ;;  %v107_v28 = vld [vmem:[%s425_s2 + $0x68] sm:$0xff]  ;;  %s298_s27 = scalar_lea.vmem %s188_s26, 128  ;;  %p303_p1 = scmp.lt.s32.totalorder %s188_s26, %s188_s26 }
   0xc   :  { %v286_v26 = vpack.c.bf16 %v105_v25, %v104_v24  ;;  %v289_v29 = vpack.c.bf16 %v107_v28, %v106_v27  ;;  %v108_v30 = vld [vmem:[%s425_s2 + $0x70] sm:$0xff]  ;;  %v109_v31 = vld [vmem:[%s425_s2 + $0x78] sm:$0xff]  ;;  %p299_p0 = scmp.ne.s32.totalorder %s188_s26, %s298_s27  ;;  %p304_p2 = scmp.lt.s32.totalorder %s298_s27, %s298_s27 }
   0xd   :  { %278 = vmatpush3.bf16.msra.mxu1 %v277_v17  ;;  %v292_v32 = vpack.c.bf16 %v109_v31, %v108_v30 }
   0xe   :  { %279 = vmatprep.subr.bf16.mxu1 %v322_v3  ;;  %p305_p3 = por %p304_p2, %p303_p1 }
  0x10   :  { %p306_p4 = pnand %p305_p3, %p299_p0 }
  0x11   :  { %281 = vmatpush3.bf16.msra.mxu1 %v280_v20 }
  0x12   :  { %282 = vmatprep.subr.bf16.mxu1 %v322_v3 }
  0x15   :  { %284 = vmatpush3.bf16.msra.mxu1 %v283_v23 }
  0x16   :  { %285 = vmatprep.subr.bf16.mxu1 %v322_v3 }
  0x19   :  { %287 = vmatpush3.bf16.msra.mxu1 %v286_v26 }
  0x1a   :  { %288 = vmatprep.subr.bf16.mxu1 %v322_v3 }
  0x1d   :  { %290 = vmatpush3.bf16.msra.mxu1 %v289_v29 }
  0x1e   :  { %291 = vmatprep.subr.bf16.mxu1 %v322_v3 }
  0x21   :  { %293 = vmatpush3.bf16.msra.mxu1 %v292_v32 }
  0xde   :  { %v90_v33 = vpop.f32.mrb[0].mxu0 }
  0xdf   :  { %v228_v34 = vpop.f32.mrb[1].mxu0  ;;  %262 = vmatmul.mubr.f32.vlgmr.msra.gmra.mrb[0].mxu1 %v90_v33 }
 0x1b2   :  { %v176_v35 = vpop.f32.mrb[0].mxu1 }
 0x1b3   :  { %180 = vst.msk [vmem:[#allocation2] sm:$0xff] %vm20_vm1, %v176_v35  ;;  %v263_v36 = vpop.f32.mrb[1].mxu1 }
 0x1b4   :  { %309 = shalt.err (!%p306_p4)
}
 0x1b5   :  { %s310_s28 = scalar_lea.hbm %s426_s3, 128 }
 0x1b6   :  { %p311_p5 = scmp.ne.s32.totalorder %s426_s3, %s310_s28  ;;  %p314_p6 = scmp.lt.u32.totalorder %s310_s28, %s426_s3 }
 0x1b8   :  { %p316_p7 = pnand %p314_p6, %p311_p5 }
 0x1ba   :  { %319 = shalt.err (!%p316_p7)
}
 0x1bb   :  { %190 = dma.vmem_to_hbm [thread:$0]  %s188_s26, 128, %s426_s3, [#allocation3]  }
 0x1bc   :  { %320 = dma.done.wait [#allocation3], 128  }
 0x1bd   :  { %321 = vsyncadd [#allocation3], 4294967168 }
 0x1be   :  { %194 = vsyncpa [#allocation3], 1 }

</bundles_post_ra>
